<compile_context>
chip_gen: v5e
topology: v5e:2x2
jax: 0.10.0
libtpu: 0.0.40
codegen_flags: <defaults>
</compile_context>

<pallas_src>
import jax
import jax.numpy as jnp
from jax.experimental import pallas as pl
from jax.experimental.pallas import tpu as pltpu


LANE = 128   # hidden/output feature dims are zero-padded to a multiple of this


def _round_up(n, m):
    return ((n + m - 1) // m) * m


def _cdiv(a, b):
    return -(-a // b)


# --------------------------------------------------------------------------- kernel


def mlp_kernel(x_ref,
               w1_ref, b1_ref,
               w2_ref, b2_ref,
               w3_ref, b3_ref,
               w4_ref, b4_ref,
               w5_ref, b5_ref,
               o_ref):
    """One batch tile: 5 MXU matmuls (bf16 operands, f32 accumulate), ReLU x4, sigmoid."""

    def layer(h, w_ref, b_ref, relu):
        # Cast the activation to the weight dtype (bf16) right at the MXU input;
        # accumulate in f32.  Bias-add / ReLU stay f32 (v5e has no bf16 VPU path).
        y = jnp.dot(h.astype(w_ref.dtype), w_ref[...],
                    preferred_element_type=jnp.float32)
        y = y + b_ref[...]                           # f32 bias [1, N_pad] broadcasts
        return jnp.maximum(y, 0.0) if relu else y

    h = x_ref[...]                                   # f32 [tile_b, input_size] (unpadded)
    h = layer(h, w1_ref, b1_ref, relu=True)          # fc1 + relu1 (dropout1 = identity)
    h = layer(h, w2_ref, b2_ref, relu=True)          # fc2 + relu2 (dropout2 = identity)
    h = layer(h, w3_ref, b3_ref, relu=True)          # fc3 + relu3 (dropout3 = identity)
    h = layer(h, w4_ref, b4_ref, relu=True)          # fc4 + relu4 (dropout4 = identity)
    h = layer(h, w5_ref, b5_ref, relu=False)         # fc5
    o_ref[...] = jax.nn.sigmoid(h).astype(o_ref.dtype)   # bf16, lane-dense store


# --------------------------------------------------------------- parameter preparation


def pad_params_for_tpu(params, compute_dtype=jnp.bfloat16):
    """Zero-pad hidden/output feature dims to multiples of 128; cast weights to bf16.

    w1 keeps its *logical* K (= input_size) so x can be passed unpadded.  Deeper
    layers' K equals the previous layer's padded N.  Biases stay f32.
    """
    padded = {}
    for i in range(1, 6):
        w = params[f"w{i}"]
        b = params[f"b{i}"]
        k_pad = w.shape[0] if i == 1 else _round_up(w.shape[0], LANE)
        n_pad = _round_up(w.shape[1], LANE)
        wp = jnp.zeros((k_pad, n_pad), compute_dtype)
        wp = wp.at[: w.shape[0], : w.shape[1]].set(w.astype(compute_dtype))
        bp = jnp.zeros((1, n_pad), jnp.float32)
        bp = bp.at[:, : b.shape[1]].set(b.astype(jnp.float32))
        padded[f"w{i}"] = wp
        padded[f"b{i}"] = bp
    return padded


# -------------------------------------------------------------------- tiling heuristics


def _sublane_rows(dtype):
    # Native row packing of a vreg: 8 for f32, 16 for bf16.
    return max(8, 32 // jnp.dtype(dtype).itemsize)


def _min_grid_steps():
    # v7x has 2 TensorCores: need >=2 "parallel" grid steps to use both.
    # On v5e/v6e the grid is a serial loop, so a single big tile is best.
    try:
        kind = jax.devices()[0].device_kind.lower()
    except Exception:
        return 1
    return 2 if ("v7" in kind or "7x" in kind) else 1


def _choose_tile(B, sub, max_rows, min_steps):
    """Pick (tile_b, grid). Single full-batch block when possible (block dim == array
    dim is always a legal BlockSpec), otherwise a multiple of `sub` rows with a
    masked partial tail block (no batch padding)."""
    if B <= max_rows and (min_steps <= 1 or B < 2 * sub):
        return B, 1
    n_tiles = max(_cdiv(B, max_rows), min_steps)
    tile_b = min(_round_up(_cdiv(B, n_tiles), sub), max_rows)
    return tile_b, _cdiv(B, tile_b)


# ------------------------------------------------------------------------ forward pass


def complex_neural_network_forward(x, params, *, compute_dtype=jnp.bfloat16,
                                   max_tile_rows=1024):
    """Run the fused MLP as a single gridded Pallas call.

    x: [B, input_size] float32 (unpadded).
    params: dict with w1..w5 ([in, out]) and b1..b5 ([1, out]) float32 arrays
            (logical, unpadded shapes).
    Returns [B, output_size] float32.
    """
    B, in_features = x.shape
    out_features = params["w5"].shape[1]

    padded = pad_params_for_tpu(params, compute_dtype)
    out_pad = padded["w5"].shape[1]
    widths = [padded[f"w{i}"].shape[1] for i in range(1, 6)]

    sub = _sublane_rows(compute_dtype)

    # VMEM-derived row cap: double-buffered f32 x tile + double-buffered bf16 out tile
    # + a few live f32 activation tiles per row; resident weights counted separately.
    per_row = 2 * in_features * 4 + 2 * out_pad * 2 + 3 * max(widths) * 4
    weight_bytes = sum(int(padded[k].size) * padded[k].dtype.itemsize for k in padded)
    budget = 20 * 2**20
    vmem_rows = max(sub, ((budget - 2 * weight_bytes) // per_row) // sub * sub)
    max_rows = max(sub, min(max_tile_rows, vmem_rows))

    tile_b, grid = _choose_tile(B, sub, max_rows, _min_grid_steps())

    # x / out tiled over the batch grid (cdiv grid; partial tail block is masked).
    x_spec = pl.BlockSpec((tile_b, in_features), lambda i: (i, 0))
    out_spec = pl.BlockSpec((tile_b, out_pad), lambda i: (i, 0))

    def resident(a, single_buffered):
        # Constant block index -> DMA'd once, VMEM-resident for the whole grid.
        if single_buffered:
            return pl.BlockSpec(a.shape, lambda i: (0, 0),
                                pipeline_mode=pl.Buffered(1))
        return pl.BlockSpec(a.shape, lambda i: (0, 0))

    args = [x]
    for li in range(1, 6):
        args += [padded[f"w{li}"], padded[f"b{li}"]]

    # Advisory cost estimate: 2*M*K*N per layer + sigmoid transcendentals.
    flops = 2 * B * sum(padded[f"w{i}"].shape[0] * padded[f"w{i}"].shape[1]
                        for i in range(1, 6))
    bytes_accessed = (sum(int(a.size) * a.dtype.itemsize for a in args)
                      + B * out_pad * 2)
    cost = pl.CostEstimate(flops=flops, transcendentals=B * out_pad,
                           bytes_accessed=bytes_accessed)

    # Explicit scoped-VMEM budget (v5e default is only 16 MiB); capped below every
    # generation's physical VMEM.
    vmem_limit = int(min(64 * 2**20,
                         max(32 * 2**20, 4 * (tile_b * per_row + 2 * weight_bytes))))

    def build(single_buffered_weights):
        in_specs = [x_spec]
        for li in range(1, 6):
            in_specs.append(resident(padded[f"w{li}"], single_buffered_weights))
            in_specs.append(resident(padded[f"b{li}"], single_buffered_weights))
        return pl.pallas_call(
            mlp_kernel,
            out_shape=jax.ShapeDtypeStruct((B, out_pad), jnp.bfloat16),
            grid=(grid,),
            in_specs=in_specs,
            out_specs=out_spec,
            compiler_params=pltpu.CompilerParams(
                dimension_semantics=("parallel",),   # shards grid across TCs on v7x
                vmem_limit_bytes=vmem_limit),
            cost_estimate=cost,
        )

    try:
        out_padded = build(single_buffered_weights=True)(*args)
    except Exception:
        # Fallback for Pallas versions without single-buffered pipeline_mode:
        # default double-buffered resident weights (tiny here anyway).
        out_padded = build(single_buffered_weights=False)(*args)

    # Strip lane padding and return f32 (bf16 store halves HBM traffic; values are
    # post-sigmoid in [0, 1] so bf16 precision is fine).
    return out_padded[:, :out_features].astype(jnp.float32)


# -------------------------------------------------------------------------- test utils


def init_params(key, input_size, h1, h2, h3, h4, output_size):
    """Deterministic init mimicking nn.Linear's U(-1/sqrt(fan_in), 1/sqrt(fan_in))."""
    sizes = [(input_size, h1), (h1, h2), (h2, h3), (h3, h4), (h4, output_size)]
    params = {}
    for i, (fan_in, fan_out) in enumerate(sizes, start=1):
        key, kw, kb = jax.random.split(key, 3)
        bound = 1.0 / jnp.sqrt(jnp.float32(fan_in))
        params[f"w{i}"] = jax.random.uniform(
            kw, (fan_in, fan_out), jnp.float32, minval=-bound, maxval=bound)
        params[f"b{i}"] = jax.random.uniform(
            kb, (1, fan_out), jnp.float32, minval=-bound, maxval=bound)
    return params


def reference_forward(x, params):
    """Plain-JAX f32 reference (dropout = identity in eval)."""
    h = x
    for i in range(1, 5):
        h = jnp.maximum(h @ params[f"w{i}"] + params[f"b{i}"], 0.0)
    h = h @ params["w5"] + params["b5"]
    return jax.nn.sigmoid(h)


if __name__ == "__main__":
    # Small shapes consistent with the module's constructor signature.
    batch = 8
    input_size, h1, h2, h3, h4, output_size = 32, 64, 64, 48, 32, 16

    key = jax.random.PRNGKey(0)
    key, kx = jax.random.split(key)
    x = jax.random.normal(kx, (batch, input_size), dtype=jnp.float32)

    params = init_params(key, input_size, h1, h2, h3, h4, output_size)

    out = complex_neural_network_forward(x, params)
    out = jax.block_until_ready(out)

    ref = reference_forward(x, params)
    assert out.shape == (batch, output_size)
    # bf16 MXU operands + bf16 output vs f32 reference -> relaxed tolerance.
    assert jnp.allclose(out, ref, atol=2e-2, rtol=2e-2), \
        "Pallas output mismatch vs reference"

    print("KERNEL_OK")
</pallas_src>

<mosaic_0001>
module attributes {stable_mosaic.version = 11 : i64} {
  func.func @mlp_kernel(%arg0: i32, %arg1: memref<8x32xf32, #tpu.memory_space<vmem>>, %arg2: memref<32x128xbf16, #tpu.memory_space<vmem>>, %arg3: memref<1x128xf32, #tpu.memory_space<vmem>>, %arg4: memref<128x128xbf16, #tpu.memory_space<vmem>>, %arg5: memref<1x128xf32, #tpu.memory_space<vmem>>, %arg6: memref<128x128xbf16, #tpu.memory_space<vmem>>, %arg7: memref<1x128xf32, #tpu.memory_space<vmem>>, %arg8: memref<128x128xbf16, #tpu.memory_space<vmem>>, %arg9: memref<1x128xf32, #tpu.memory_space<vmem>>, %arg10: memref<128x128xbf16, #tpu.memory_space<vmem>>, %arg11: memref<1x128xf32, #tpu.memory_space<vmem>>, %arg12: memref<8x128xbf16, #tpu.memory_space<vmem>>) attributes {dimension_semantics = [#tpu.dimension_semantics<parallel>], iteration_bounds = array<i64: 1>, scalar_prefetch = 0 : i64, scratch_operands = 0 : i64, tpu.core_type = #tpu.core_type<tc>, window_params = [{transform_indices = @transform_0, window_bounds = array<i64: 8, 32>}, {pipeline_mode = #tpu.pipeline_mode<synchronous>, transform_indices = @transform_1, window_bounds = array<i64: 32, 128>}, {pipeline_mode = #tpu.pipeline_mode<synchronous>, transform_indices = @transform_2, window_bounds = array<i64: 1, 128>}, {pipeline_mode = #tpu.pipeline_mode<synchronous>, transform_indices = @transform_3, window_bounds = array<i64: 128, 128>}, {pipeline_mode = #tpu.pipeline_mode<synchronous>, transform_indices = @transform_4, window_bounds = array<i64: 1, 128>}, {pipeline_mode = #tpu.pipeline_mode<synchronous>, transform_indices = @transform_5, window_bounds = array<i64: 128, 128>}, {pipeline_mode = #tpu.pipeline_mode<synchronous>, transform_indices = @transform_6, window_bounds = array<i64: 1, 128>}, {pipeline_mode = #tpu.pipeline_mode<synchronous>, transform_indices = @transform_7, window_bounds = array<i64: 128, 128>}, {pipeline_mode = #tpu.pipeline_mode<synchronous>, transform_indices = @transform_8, window_bounds = array<i64: 1, 128>}, {pipeline_mode = #tpu.pipeline_mode<synchronous>, transform_indices = @transform_9, window_bounds = array<i64: 128, 128>}, {pipeline_mode = #tpu.pipeline_mode<synchronous>, transform_indices = @transform_10, window_bounds = array<i64: 1, 128>}, {transform_indices = @transform_11, window_bounds = array<i64: 8, 128>}]} {
    %c0 = arith.constant 0 : index
    %c0_0 = arith.constant 0 : index
    %0 = vector.load %arg1[%c0, %c0_0] : memref<8x32xf32, #tpu.memory_space<vmem>>, vector<8x32xf32>
    %1 = arith.truncf %0 : vector<8x32xf32> to vector<8x32xbf16>
    %c0_1 = arith.constant 0 : index
    %c0_2 = arith.constant 0 : index
    %2 = vector.load %arg2[%c0_1, %c0_2] : memref<32x128xbf16, #tpu.memory_space<vmem>>, vector<32x128xbf16>
    %cst = arith.constant dense<0.000000e+00> : vector<8x128xf32>
    %3 = tpu.matmul %1, %2, %cst {dimension_numbers = #tpu.dot_dimension_numbers<[1], [0], [0], [1], [0, 0, 1, 1], [], []>} : vector<8x32xbf16>, vector<32x128xbf16>, vector<8x128xf32> -> vector<8x128xf32>
    %c0_3 = arith.constant 0 : index
    %c0_4 = arith.constant 0 : index
    %4 = vector.load %arg3[%c0_3, %c0_4] : memref<1x128xf32, #tpu.memory_space<vmem>>, vector<1x128xf32>
    %5 = vector.broadcast %4 : vector<1x128xf32> to vector<8x128xf32>
    %6 = arith.addf %3, %5 : vector<8x128xf32>
    %cst_5 = arith.constant 0.000000e+00 : f32
    %7 = vector.broadcast %cst_5 : f32 to vector<8x128xf32>
    %8 = arith.maximumf %6, %7 : vector<8x128xf32>
    %9 = arith.truncf %8 : vector<8x128xf32> to vector<8x128xbf16>
    %c0_6 = arith.constant 0 : index
    %c0_7 = arith.constant 0 : index
    %10 = vector.load %arg4[%c0_6, %c0_7] : memref<128x128xbf16, #tpu.memory_space<vmem>>, vector<128x128xbf16>
    %cst_8 = arith.constant dense<0.000000e+00> : vector<8x128xf32>
    %11 = tpu.matmul %9, %10, %cst_8 {dimension_numbers = #tpu.dot_dimension_numbers<[1], [0], [0], [1], [0, 0, 1, 1], [], []>} : vector<8x128xbf16>, vector<128x128xbf16>, vector<8x128xf32> -> vector<8x128xf32>
    %c0_9 = arith.constant 0 : index
    %c0_10 = arith.constant 0 : index
    %12 = vector.load %arg5[%c0_9, %c0_10] : memref<1x128xf32, #tpu.memory_space<vmem>>, vector<1x128xf32>
    %13 = vector.broadcast %12 : vector<1x128xf32> to vector<8x128xf32>
    %14 = arith.addf %11, %13 : vector<8x128xf32>
    %cst_11 = arith.constant 0.000000e+00 : f32
    %15 = vector.broadcast %cst_11 : f32 to vector<8x128xf32>
    %16 = arith.maximumf %14, %15 : vector<8x128xf32>
    %17 = arith.truncf %16 : vector<8x128xf32> to vector<8x128xbf16>
    %c0_12 = arith.constant 0 : index
    %c0_13 = arith.constant 0 : index
    %18 = vector.load %arg6[%c0_12, %c0_13] : memref<128x128xbf16, #tpu.memory_space<vmem>>, vector<128x128xbf16>
    %cst_14 = arith.constant dense<0.000000e+00> : vector<8x128xf32>
    %19 = tpu.matmul %17, %18, %cst_14 {dimension_numbers = #tpu.dot_dimension_numbers<[1], [0], [0], [1], [0, 0, 1, 1], [], []>} : vector<8x128xbf16>, vector<128x128xbf16>, vector<8x128xf32> -> vector<8x128xf32>
    %c0_15 = arith.constant 0 : index
    %c0_16 = arith.constant 0 : index
    %20 = vector.load %arg7[%c0_15, %c0_16] : memref<1x128xf32, #tpu.memory_space<vmem>>, vector<1x128xf32>
    %21 = vector.broadcast %20 : vector<1x128xf32> to vector<8x128xf32>
    %22 = arith.addf %19, %21 : vector<8x128xf32>
    %cst_17 = arith.constant 0.000000e+00 : f32
    %23 = vector.broadcast %cst_17 : f32 to vector<8x128xf32>
    %24 = arith.maximumf %22, %23 : vector<8x128xf32>
    %25 = arith.truncf %24 : vector<8x128xf32> to vector<8x128xbf16>
    %c0_18 = arith.constant 0 : index
    %c0_19 = arith.constant 0 : index
    %26 = vector.load %arg8[%c0_18, %c0_19] : memref<128x128xbf16, #tpu.memory_space<vmem>>, vector<128x128xbf16>
    %cst_20 = arith.constant dense<0.000000e+00> : vector<8x128xf32>
    %27 = tpu.matmul %25, %26, %cst_20 {dimension_numbers = #tpu.dot_dimension_numbers<[1], [0], [0], [1], [0, 0, 1, 1], [], []>} : vector<8x128xbf16>, vector<128x128xbf16>, vector<8x128xf32> -> vector<8x128xf32>
    %c0_21 = arith.constant 0 : index
    %c0_22 = arith.constant 0 : index
    %28 = vector.load %arg9[%c0_21, %c0_22] : memref<1x128xf32, #tpu.memory_space<vmem>>, vector<1x128xf32>
    %29 = vector.broadcast %28 : vector<1x128xf32> to vector<8x128xf32>
    %30 = arith.addf %27, %29 : vector<8x128xf32>
    %cst_23 = arith.constant 0.000000e+00 : f32
    %31 = vector.broadcast %cst_23 : f32 to vector<8x128xf32>
    %32 = arith.maximumf %30, %31 : vector<8x128xf32>
    %33 = arith.truncf %32 : vector<8x128xf32> to vector<8x128xbf16>
    %c0_24 = arith.constant 0 : index
    %c0_25 = arith.constant 0 : index
    %34 = vector.load %arg10[%c0_24, %c0_25] : memref<128x128xbf16, #tpu.memory_space<vmem>>, vector<128x128xbf16>
    %cst_26 = arith.constant dense<0.000000e+00> : vector<8x128xf32>
    %35 = tpu.matmul %33, %34, %cst_26 {dimension_numbers = #tpu.dot_dimension_numbers<[1], [0], [0], [1], [0, 0, 1, 1], [], []>} : vector<8x128xbf16>, vector<128x128xbf16>, vector<8x128xf32> -> vector<8x128xf32>
    %c0_27 = arith.constant 0 : index
    %c0_28 = arith.constant 0 : index
    %36 = vector.load %arg11[%c0_27, %c0_28] : memref<1x128xf32, #tpu.memory_space<vmem>>, vector<1x128xf32>
    %37 = vector.broadcast %36 : vector<1x128xf32> to vector<8x128xf32>
    %38 = arith.addf %35, %37 : vector<8x128xf32>
    %39 = arith.negf %38 : vector<8x128xf32>
    %40 = math.exp %39 : vector<8x128xf32>
    %cst_29 = arith.constant 1.000000e+00 : f32
    %41 = vector.broadcast %cst_29 : f32 to vector<8x128xf32>
    %42 = arith.addf %41, %40 : vector<8x128xf32>
    %43 = arith.divf %41, %42 : vector<8x128xf32>
    %44 = arith.truncf %43 : vector<8x128xf32> to vector<8x128xbf16>
    %c0_30 = arith.constant 0 : index
    %c0_31 = arith.constant 0 : index
    %45 = vector.load %arg12[%c0_30, %c0_31] : memref<8x128xbf16, #tpu.memory_space<vmem>>, vector<8x128xbf16>
    tpu.vector_store %arg12[%c0_30, %c0_31], %44 {strides = array<i32>} : memref<8x128xbf16, #tpu.memory_space<vmem>>, vector<8x128xbf16>,
    return
  }
  func.func @transform_0(%arg0: i32) -> (i32, i32) {
    %c0_i32 = arith.constant 0 : i32
    %c0_i32_0 = arith.constant 0 : i32
    return %arg0, %c0_i32 : i32, i32
  }
  func.func @transform_1(%arg0: i32) -> (i32, i32) {
    %c0_i32 = arith.constant 0 : i32
    %c0_i32_0 = arith.constant 0 : i32
    %c0_i32_1 = arith.constant 0 : i32
    return %c0_i32, %c0_i32_0 : i32, i32
  }
  func.func @transform_2(%arg0: i32) -> (i32, i32) {
    %c0_i32 = arith.constant 0 : i32
    %c0_i32_0 = arith.constant 0 : i32
    %c0_i32_1 = arith.constant 0 : i32
    return %c0_i32, %c0_i32_0 : i32, i32
  }
  func.func @transform_3(%arg0: i32) -> (i32, i32) {
    %c0_i32 = arith.constant 0 : i32
    %c0_i32_0 = arith.constant 0 : i32
    %c0_i32_1 = arith.constant 0 : i32
    return %c0_i32, %c0_i32_0 : i32, i32
  }
  func.func @transform_4(%arg0: i32) -> (i32, i32) {
    %c0_i32 = arith.constant 0 : i32
    %c0_i32_0 = arith.constant 0 : i32
    %c0_i32_1 = arith.constant 0 : i32
    return %c0_i32, %c0_i32_0 : i32, i32
  }
  func.func @transform_5(%arg0: i32) -> (i32, i32) {
    %c0_i32 = arith.constant 0 : i32
    %c0_i32_0 = arith.constant 0 : i32
    %c0_i32_1 = arith.constant 0 : i32
    return %c0_i32, %c0_i32_0 : i32, i32
  }
  func.func @transform_6(%arg0: i32) -> (i32, i32) {
    %c0_i32 = arith.constant 0 : i32
    %c0_i32_0 = arith.constant 0 : i32
    %c0_i32_1 = arith.constant 0 : i32
    return %c0_i32, %c0_i32_0 : i32, i32
  }
  func.func @transform_7(%arg0: i32) -> (i32, i32) {
    %c0_i32 = arith.constant 0 : i32
    %c0_i32_0 = arith.constant 0 : i32
    %c0_i32_1 = arith.constant 0 : i32
    return %c0_i32, %c0_i32_0 : i32, i32
  }
  func.func @transform_8(%arg0: i32) -> (i32, i32) {
    %c0_i32 = arith.constant 0 : i32
    %c0_i32_0 = arith.constant 0 : i32
    %c0_i32_1 = arith.constant 0 : i32
    return %c0_i32, %c0_i32_0 : i32, i32
  }
  func.func @transform_9(%arg0: i32) -> (i32, i32) {
    %c0_i32 = arith.constant 0 : i32
    %c0_i32_0 = arith.constant 0 : i32
    %c0_i32_1 = arith.constant 0 : i32
    return %c0_i32, %c0_i32_0 : i32, i32
  }
  func.func @transform_10(%arg0: i32) -> (i32, i32) {
    %c0_i32 = arith.constant 0 : i32
    %c0_i32_0 = arith.constant 0 : i32
    %c0_i32_1 = arith.constant 0 : i32
    return %c0_i32, %c0_i32_0 : i32, i32
  }
  func.func @transform_11(%arg0: i32) -> (i32, i32) {
    %c0_i32 = arith.constant 0 : i32
    %c0_i32_0 = arith.constant 0 : i32
    return %arg0, %c0_i32 : i32, i32
  }
}

module attributes {stable_mosaic.version = 11 : i64} {
  func.func @mlp_kernel(%arg0: i32, %arg1: memref<8x32xf32, #tpu.memory_space<vmem>>, %arg2: memref<32x128xbf16, #tpu.memory_space<vmem>>, %arg3: memref<1x128xf32, #tpu.memory_space<vmem>>, %arg4: memref<128x128xbf16, #tpu.memory_space<vmem>>, %arg5: memref<1x128xf32, #tpu.memory_space<vmem>>, %arg6: memref<128x128xbf16, #tpu.memory_space<vmem>>, %arg7: memref<1x128xf32, #tpu.memory_space<vmem>>, %arg8: memref<128x128xbf16, #tpu.memory_space<vmem>>, %arg9: memref<1x128xf32, #tpu.memory_space<vmem>>, %arg10: memref<128x128xbf16, #tpu.memory_space<vmem>>, %arg11: memref<1x128xf32, #tpu.memory_space<vmem>>, %arg12: memref<8x128xbf16, #tpu.memory_space<vmem>>) attributes {dimension_semantics = [#tpu.dimension_semantics<parallel>], iteration_bounds = array<i64: 1>, scalar_prefetch = 0 : i64, scratch_operands = 0 : i64, tpu.core_type = #tpu.core_type<tc>, window_params = [{transform_indices = @transform_0, window_bounds = array<i64: 8, 32>}, {pipeline_mode = #tpu.pipeline_mode<synchronous>, transform_indices = @transform_1, window_bounds = array<i64: 32, 128>}, {pipeline_mode = #tpu.pipeline_mode<synchronous>, transform_indices = @transform_2, window_bounds = array<i64: 1, 128>}, {pipeline_mode = #tpu.pipeline_mode<synchronous>, transform_indices = @transform_3, window_bounds = array<i64: 128, 128>}, {pipeline_mode = #tpu.pipeline_mode<synchronous>, transform_indices = @transform_4, window_bounds = array<i64: 1, 128>}, {pipeline_mode = #tpu.pipeline_mode<synchronous>, transform_indices = @transform_5, window_bounds = array<i64: 128, 128>}, {pipeline_mode = #tpu.pipeline_mode<synchronous>, transform_indices = @transform_6, window_bounds = array<i64: 1, 128>}, {pipeline_mode = #tpu.pipeline_mode<synchronous>, transform_indices = @transform_7, window_bounds = array<i64: 128, 128>}, {pipeline_mode = #tpu.pipeline_mode<synchronous>, transform_indices = @transform_8, window_bounds = array<i64: 1, 128>}, {pipeline_mode = #tpu.pipeline_mode<synchronous>, transform_indices = @transform_9, window_bounds = array<i64: 128, 128>}, {pipeline_mode = #tpu.pipeline_mode<synchronous>, transform_indices = @transform_10, window_bounds = array<i64: 1, 128>}, {transform_indices = @transform_11, window_bounds = array<i64: 8, 128>}]} {
    %c0 = arith.constant 0 : index
    %c0_0 = arith.constant 0 : index
    %0 = vector.load %arg1[%c0, %c0_0] : memref<8x32xf32, #tpu.memory_space<vmem>>, vector<8x32xf32>
    %1 = arith.truncf %0 : vector<8x32xf32> to vector<8x32xbf16>
    %c0_1 = arith.constant 0 : index
    %c0_2 = arith.constant 0 : index
    %2 = vector.load %arg2[%c0_1, %c0_2] : memref<32x128xbf16, #tpu.memory_space<vmem>>, vector<32x128xbf16>
    %cst = arith.constant dense<0.000000e+00> : vector<8x128xf32>
    %3 = tpu.matmul %1, %2, %cst {dimension_numbers = #tpu.dot_dimension_numbers<[1], [0], [0], [1], [0, 0, 1, 1], [], []>} : vector<8x32xbf16>, vector<32x128xbf16>, vector<8x128xf32> -> vector<8x128xf32>
    %c0_3 = arith.constant 0 : index
    %c0_4 = arith.constant 0 : index
    %4 = vector.load %arg3[%c0_3, %c0_4] : memref<1x128xf32, #tpu.memory_space<vmem>>, vector<1x128xf32>
    %5 = vector.broadcast %4 : vector<1x128xf32> to vector<8x128xf32>
    %6 = arith.addf %3, %5 : vector<8x128xf32>
    %cst_5 = arith.constant 0.000000e+00 : f32
    %7 = vector.broadcast %cst_5 : f32 to vector<8x128xf32>
    %8 = arith.maximumf %6, %7 : vector<8x128xf32>
    %9 = arith.truncf %8 : vector<8x128xf32> to vector<8x128xbf16>
    %c0_6 = arith.constant 0 : index
    %c0_7 = arith.constant 0 : index
    %10 = vector.load %arg4[%c0_6, %c0_7] : memref<128x128xbf16, #tpu.memory_space<vmem>>, vector<128x128xbf16>
    %cst_8 = arith.constant dense<0.000000e+00> : vector<8x128xf32>
    %11 = tpu.matmul %9, %10, %cst_8 {dimension_numbers = #tpu.dot_dimension_numbers<[1], [0], [0], [1], [0, 0, 1, 1], [], []>} : vector<8x128xbf16>, vector<128x128xbf16>, vector<8x128xf32> -> vector<8x128xf32>
    %c0_9 = arith.constant 0 : index
    %c0_10 = arith.constant 0 : index
    %12 = vector.load %arg5[%c0_9, %c0_10] : memref<1x128xf32, #tpu.memory_space<vmem>>, vector<1x128xf32>
    %13 = vector.broadcast %12 : vector<1x128xf32> to vector<8x128xf32>
    %14 = arith.addf %11, %13 : vector<8x128xf32>
    %cst_11 = arith.constant 0.000000e+00 : f32
    %15 = vector.broadcast %cst_11 : f32 to vector<8x128xf32>
    %16 = arith.maximumf %14, %15 : vector<8x128xf32>
    %17 = arith.truncf %16 : vector<8x128xf32> to vector<8x128xbf16>
    %c0_12 = arith.constant 0 : index
    %c0_13 = arith.constant 0 : index
    %18 = vector.load %arg6[%c0_12, %c0_13] : memref<128x128xbf16, #tpu.memory_space<vmem>>, vector<128x128xbf16>
    %cst_14 = arith.constant dense<0.000000e+00> : vector<8x128xf32>
    %19 = tpu.matmul %17, %18, %cst_14 {dimension_numbers = #tpu.dot_dimension_numbers<[1], [0], [0], [1], [0, 0, 1, 1], [], []>} : vector<8x128xbf16>, vector<128x128xbf16>, vector<8x128xf32> -> vector<8x128xf32>
    %c0_15 = arith.constant 0 : index
    %c0_16 = arith.constant 0 : index
    %20 = vector.load %arg7[%c0_15, %c0_16] : memref<1x128xf32, #tpu.memory_space<vmem>>, vector<1x128xf32>
    %21 = vector.broadcast %20 : vector<1x128xf32> to vector<8x128xf32>
    %22 = arith.addf %19, %21 : vector<8x128xf32>
    %cst_17 = arith.constant 0.000000e+00 : f32
    %23 = vector.broadcast %cst_17 : f32 to vector<8x128xf32>
    %24 = arith.maximumf %22, %23 : vector<8x128xf32>
    %25 = arith.truncf %24 : vector<8x128xf32> to vector<8x128xbf16>
    %c0_18 = arith.constant 0 : index
    %c0_19 = arith.constant 0 : index
    %26 = vector.load %arg8[%c0_18, %c0_19] : memref<128x128xbf16, #tpu.memory_space<vmem>>, vector<128x128xbf16>
    %cst_20 = arith.constant dense<0.000000e+00> : vector<8x128xf32>
    %27 = tpu.matmul %25, %26, %cst_20 {dimension_numbers = #tpu.dot_dimension_numbers<[1], [0], [0], [1], [0, 0, 1, 1], [], []>} : vector<8x128xbf16>, vector<128x128xbf16>, vector<8x128xf32> -> vector<8x128xf32>
    %c0_21 = arith.constant 0 : index
    %c0_22 = arith.constant 0 : index
    %28 = vector.load %arg9[%c0_21, %c0_22] : memref<1x128xf32, #tpu.memory_space<vmem>>, vector<1x128xf32>
    %29 = vector.broadcast %28 : vector<1x128xf32> to vector<8x128xf32>
    %30 = arith.addf %27, %29 : vector<8x128xf32>
    %cst_23 = arith.constant 0.000000e+00 : f32
    %31 = vector.broadcast %cst_23 : f32 to vector<8x128xf32>
    %32 = arith.maximumf %30, %31 : vector<8x128xf32>
    %33 = arith.truncf %32 : vector<8x128xf32> to vector<8x128xbf16>
    %c0_24 = arith.constant 0 : index
    %c0_25 = arith.constant 0 : index
    %34 = vector.load %arg10[%c0_24, %c0_25] : memref<128x128xbf16, #tpu.memory_space<vmem>>, vector<128x128xbf16>
    %cst_26 = arith.constant dense<0.000000e+00> : vector<8x128xf32>
    %35 = tpu.matmul %33, %34, %cst_26 {dimension_numbers = #tpu.dot_dimension_numbers<[1], [0], [0], [1], [0, 0, 1, 1], [], []>} : vector<8x128xbf16>, vector<128x128xbf16>, vector<8x128xf32> -> vector<8x128xf32>
    %c0_27 = arith.constant 0 : index
    %c0_28 = arith.constant 0 : index
    %36 = vector.load %arg11[%c0_27, %c0_28] : memref<1x128xf32, #tpu.memory_space<vmem>>, vector<1x128xf32>
    %37 = vector.broadcast %36 : vector<1x128xf32> to vector<8x128xf32>
    %38 = arith.addf %35, %37 : vector<8x128xf32>
    %39 = arith.negf %38 : vector<8x128xf32>
    %40 = math.exp %39 : vector<8x128xf32>
    %cst_29 = arith.constant 1.000000e+00 : f32
    %41 = vector.broadcast %cst_29 : f32 to vector<8x128xf32>
    %42 = arith.addf %41, %40 : vector<8x128xf32>
    %43 = arith.divf %41, %42 : vector<8x128xf32>
    %44 = arith.truncf %43 : vector<8x128xf32> to vector<8x128xbf16>
    %c0_30 = arith.constant 0 : index
    %c0_31 = arith.constant 0 : index
    %45 = vector.load %arg12[%c0_30, %c0_31] : memref<8x128xbf16, #tpu.memory_space<vmem>>, vector<8x128xbf16>
    tpu.vector_store %arg12[%c0_30, %c0_31], %44 {strides = array<i32>} : memref<8x128xbf16, #tpu.memory_space<vmem>>, vector<8x128xbf16>,
    return
  }
  func.func @transform_0(%arg0: i32) -> (i32, i32) {
    %c0_i32 = arith.constant 0 : i32
    %c0_i32_0 = arith.constant 0 : i32
    return %arg0, %c0_i32 : i32, i32
  }
  func.func @transform_1(%arg0: i32) -> (i32, i32) {
    %c0_i32 = arith.constant 0 : i32
    %c0_i32_0 = arith.constant 0 : i32
    %c0_i32_1 = arith.constant 0 : i32
    return %c0_i32, %c0_i32_0 : i32, i32
  }
  func.func @transform_2(%arg0: i32) -> (i32, i32) {
    %c0_i32 = arith.constant 0 : i32
    %c0_i32_0 = arith.constant 0 : i32
    %c0_i32_1 = arith.constant 0 : i32
    return %c0_i32, %c0_i32_0 : i32, i32
  }
  func.func @transform_3(%arg0: i32) -> (i32, i32) {
    %c0_i32 = arith.constant 0 : i32
    %c0_i32_0 = arith.constant 0 : i32
    %c0_i32_1 = arith.constant 0 : i32
    return %c0_i32, %c0_i32_0 : i32, i32
  }
  func.func @transform_4(%arg0: i32) -> (i32, i32) {
    %c0_i32 = arith.constant 0 : i32
    %c0_i32_0 = arith.constant 0 : i32
    %c0_i32_1 = arith.constant 0 : i32
    return %c0_i32, %c0_i32_0 : i32, i32
  }
  func.func @transform_5(%arg0: i32) -> (i32, i32) {
    %c0_i32 = arith.constant 0 : i32
    %c0_i32_0 = arith.constant 0 : i32
    %c0_i32_1 = arith.constant 0 : i32
    return %c0_i32, %c0_i32_0 : i32, i32
  }
  func.func @transform_6(%arg0: i32) -> (i32, i32) {
    %c0_i32 = arith.constant 0 : i32
    %c0_i32_0 = arith.constant 0 : i32
    %c0_i32_1 = arith.constant 0 : i32
    return %c0_i32, %c0_i32_0 : i32, i32
  }
  func.func @transform_7(%arg0: i32) -> (i32, i32) {
    %c0_i32 = arith.constant 0 : i32
    %c0_i32_0 = arith.constant 0 : i32
    %c0_i32_1 = arith.constant 0 : i32
    return %c0_i32, %c0_i32_0 : i32, i32
  }
  func.func @transform_8(%arg0: i32) -> (i32, i32) {
    %c0_i32 = arith.constant 0 : i32
    %c0_i32_0 = arith.constant 0 : i32
    %c0_i32_1 = arith.constant 0 : i32
    return %c0_i32, %c0_i32_0 : i32, i32
  }
  func.func @transform_9(%arg0: i32) -> (i32, i32) {
    %c0_i32 = arith.constant 0 : i32
    %c0_i32_0 = arith.constant 0 : i32
    %c0_i32_1 = arith.constant 0 : i32
    return %c0_i32, %c0_i32_0 : i32, i32
  }
  func.func @transform_10(%arg0: i32) -> (i32, i32) {
    %c0_i32 = arith.constant 0 : i32
    %c0_i32_0 = arith.constant 0 : i32
    %c0_i32_1 = arith.constant 0 : i32
    return %c0_i32, %c0_i32_0 : i32, i32
  }
  func.func @transform_11(%arg0: i32) -> (i32, i32) {
    %c0_i32 = arith.constant 0 : i32
    %c0_i32_0 = arith.constant 0 : i32
    return %arg0, %c0_i32 : i32, i32
  }
}

</mosaic_0001>

<bundles_post_ra>
// kernel: tpu_custom_call.1
= control target key start
LH: loop header
LB: loop body
LE: loop exit
PB: predicated region body
PF: predicated region fallthrough
CT: control target
= control target key end

     0   :  { %16 = vsyncpa [#allocation3], 0  ;;  %s1032_s0 = inlined_call_operand.hbm [shape: f32[8,32], index: 0, kind: input, shape index: {}]   ;;  %s1033_s1 = inlined_call_operand.hbm [shape: bf16[32,128], index: 1, kind: input, shape index: {}]   ;;  %s1034_s2 = inlined_call_operand.vmem [shape: f32[1,128], index: 2, kind: input, shape index: {}]   ;;  %s1035_s3 = inlined_call_operand.hbm [shape: bf16[128,128], index: 3, kind: input, shape index: {}]   ;;  %s1036_s4 = inlined_call_operand.vmem [shape: f32[1,128], index: 4, kind: input, shape index: {}]   ;;  %s1037_s5 = inlined_call_operand.hbm [shape: bf16[128,128], index: 5, kind: input, shape index: {}]   ;;  %s1038_s6 = inlined_call_operand.vmem [shape: f32[1,128], index: 6, kind: input, shape index: {}]   ;;  %s1039_s7 = inlined_call_operand.hbm [shape: bf16[128,128], index: 7, kind: input, shape index: {}]   ;;  %s1040_s8 = inlined_call_operand.vmem [shape: f32[1,128], index: 8, kind: input, shape index: {}]   ;;  %s1041_s9 = inlined_call_operand.hbm [shape: bf16[128,128], index: 9, kind: input, shape index: {}]   ;;  %s1042_s10 = inlined_call_operand.vmem [shape: f32[1,128], index: 10, kind: input, shape index: {}]   ;;  %s1043_s11 = inlined_call_operand.hbm [shape: bf16[8,128], index: 11, kind: output, shape index: {}]  }
   0x1   :  { %17 = vsyncpa [#allocation6], 0 }
   0x2   :  { %18 = vsyncpa [#allocation9], 0 }
   0x3   :  { %19 = vsyncpa [#allocation12], 0  ;;  %s36_s19 = sshll.u32 %s1033_s1, 4  ;;  %s37_s19 = int_to_ptr.hbm [resolvable:$true] %s36_s19 }
   0x4   :  { %20 = vsyncpa [#allocation4], 0  ;;  %s912_s20 = smov [#allocation5]   ;;  %s66_s24 = sshll.u32 %s1037_s5, 4  ;;  %s67_s24 = int_to_ptr.hbm [resolvable:$true] %s66_s24 }
   0x5   :  { %s38_s21 = sshll.u32 %s912_s20, 4  ;;  %s913_s25 = smov 64   ;;  %s39_s21 = int_to_ptr.vmem [resolvable:$true] %s38_s21 }
   0x6   :  { %s914_s26 = smov 4   ;;  %s915_s27 = smov [#allocation8]  }
   0x7   :  { %44 = dma.hbm_to_vmem [thread:$0]  %s37_s19, 256, %s39_s21, [#allocation6], %s913_s25, %s913_s25, %s914_s26  }
   0x8   :  { %s68_s28 = sshll.u32 %s915_s27, 4  ;;  %s26_s30 = sshll.u32 %s1032_s0, 4  ;;  %s69_s28 = int_to_ptr.vmem [resolvable:$true] %s68_s28  ;;  %s27_s30 = int_to_ptr.hbm [resolvable:$true] %s26_s30 }
   0x9   :  { %74 = dma.hbm_to_vmem [thread:$0]  %s67_s24, 1024, %s69_s28, [#allocation9], %s913_s25, %s913_s25, %s914_s26  }
   0xa   :  { %s51_s13 = sshll.u32 %s1035_s3, 4  ;;  %s916_s14 = smov [#allocation2]   ;;  %s52_s13 = int_to_ptr.hbm [resolvable:$true] %s51_s13 }
   0xb   :  { %s28_s15 = sshll.u32 %s916_s14, 4  ;;  %s917_s16 = smov [#allocation7]   ;;  %s29_s15 = int_to_ptr.vmem [resolvable:$true] %s28_s15 }
   0xc   :  { %31 = dma.hbm_to_vmem [thread:$0]  %s27_s30, 128, %s29_s15, [#allocation3]  }
   0xd   :  { %s53_s17 = sshll.u32 %s917_s16, 4  ;;  %s81_s0 = sshll.u32 %s1039_s7, 4  ;;  %s54_s17 = int_to_ptr.vmem [resolvable:$true] %s53_s17  ;;  %s82_s0 = int_to_ptr.hbm [resolvable:$true] %s81_s0 }
   0xe   :  { %59 = dma.hbm_to_vmem [thread:$0]  %s52_s13, 1024, %s54_s17, [#allocation6], %s913_s25, %s913_s25, %s914_s26  }
   0xf   :  { %s96_s3 = sshll.u32 %s1041_s9, 4  ;;  %s918_s22 = smov [#allocation10]   ;;  %s97_s3 = int_to_ptr.hbm [resolvable:$true] %s96_s3 }
  0x10   :  { %s83_s23 = sshll.u32 %s918_s22, 4  ;;  %s919_s24 = smov [#allocation11]   ;;  %s84_s23 = int_to_ptr.vmem [resolvable:$true] %s83_s23 }
  0x11   :  { %89 = dma.hbm_to_vmem [thread:$0]  %s82_s0, 1024, %s84_s23, [#allocation9], %s913_s25, %s913_s25, %s914_s26  }
  0x12   :  { %s98_s7 = sshll.u32 %s919_s24, 4  ;;  %s99_s7 = int_to_ptr.vmem [resolvable:$true] %s98_s7 }
  0x13   :  { %104 = dma.hbm_to_vmem [thread:$0]  %s97_s3, 1024, %s99_s7, [#allocation12], %s913_s25, %s913_s25, %s914_s26  }
  0x14   :  { %902 = dma.done.wait [#allocation3], 128  }
  0x15   :  { %903 = vsyncadd [#allocation3], 4294967168 }
  0x16   :  { %904 = dma.done.wait [#allocation6], 1280  }
  0x17   :  { %905 = vsyncadd [#allocation6], 4294966016 }
  0x18   :  { %906 = dma.done.wait [#allocation9], 2048  }
  0x19   :  { %907 = vsyncadd [#allocation9], 4294965248 }
  0x1a   :  { %908 = dma.done.wait [#allocation12], 1024  }
  0x1b   :  { %909 = vsyncadd [#allocation12], 4294966272  ;;  %v683_v0 = vld [vmem:[#allocation5 + $0x8] sm:$0xff]  ;;  %v682_v2 = vld [vmem:[#allocation5] sm:$0xff]  ;;  %vm154_vm0 = vcmask 261120   ;;  %s531_s12 = sshll.u32 %s1043_s11, 4  ;;  %s532_s12 = int_to_ptr.hbm [resolvable:$true] %s531_s12 }
  0x1c   :  { %v691_v1 = vld [vmem:[#allocation7 + $0x38] sm:$0xff]  ;;  %164 = vmatpush.bf16.msra.mxu0 %v683_v0  ;;  %v132_v3 = vld [vmem:[#allocation2] sm:$0xff]  ;;  %v690_v4 = vld [vmem:[#allocation7 + $0x30] sm:$0xff] }
  0x1d   :  { %241 = vmatpush.bf16.msra.mxu1 %v691_v1  ;;  %v133_v5 = vpack.c.bf16 %v132_v3, %v132_v3  ;;  %v689_v6 = vld [vmem:[#allocation7 + $0x28] sm:$0xff]  ;;  %v688_v7 = vld [vmem:[#allocation7 + $0x20] sm:$0xff]  ;;  %v687_v8 = vld [vmem:[#allocation7 + $0x18] sm:$0xff] }
  0x1e   :  { %v686_v9 = vld [vmem:[#allocation7 + $0x10] sm:$0xff]  ;;  %v685_v10 = vld [vmem:[#allocation7 + $0x8] sm:$0xff]  ;;  %v684_v11 = vld [vmem:[#allocation7] sm:$0xff] }
  0x1f   :  { %v699_v12 = vld [vmem:[#allocation8 + $0x38] sm:$0xff]  ;;  %v698_v13 = vld [vmem:[#allocation8 + $0x30] sm:$0xff]  ;;  %v697_v14 = vld [vmem:[#allocation8 + $0x28] sm:$0xff] }
  0x20   :  { %165 = vmatpush.bf16.msra.mxu0 %v682_v2  ;;  %324 = vmatpush.bf16.msra.mxu2 %v699_v12  ;;  %v696_v15 = vld [vmem:[#allocation8 + $0x20] sm:$0xff]  ;;  %v695_v16 = vld [vmem:[#allocation8 + $0x18] sm:$0xff]  ;;  %v694_v17 = vld [vmem:[#allocation8 + $0x10] sm:$0xff] }
  0x21   :  { %242 = vmatpush.bf16.msra.mxu1 %v690_v4  ;;  %v725_v18 = vld [vmem:[%s1034_s2] ss:$0 sm:$0xff]  ;;  %v692_v25 = vld [vmem:[#allocation8] sm:$0xff]  ;;  %v707_v26 = vld [vmem:[#allocation10 + $0x38] sm:$0xff] }
  0x22   :  { %v693_v24 = vld [vmem:[#allocation8 + $0x8] sm:$0xff]  ;;  %407 = vmatpush.bf16.msra.mxu3 %v707_v26  ;;  %v706_v27 = vld [vmem:[#allocation10 + $0x30] sm:$0xff]  ;;  %v704_v29 = vld [vmem:[#allocation10 + $0x20] sm:$0xff] }
  0x23   :  { %552 = vmatmul.msk.bf16.vlgmr.msra.gmra.mxu0 %vm154_vm0, %v133_v5  ;;  %v705_v28 = vld [vmem:[#allocation10 + $0x28] sm:$0xff]  ;;  %v703_v30 = vld [vmem:[#allocation10 + $0x18] sm:$0xff]  ;;  %v702_v31 = vld [vmem:[#allocation10 + $0x10] sm:$0xff] }
  0x24   :  { %325 = vmatpush.bf16.msra.mxu2 %v698_v13  ;;  %v726_v32 = vld [vmem:[%s1036_s4] ss:$0 sm:$0xff]  ;;  %v700_v39 = vld [vmem:[#allocation10] sm:$0xff]  ;;  %v715_v40 = vld [vmem:[#allocation11 + $0x38] sm:$0xff] }
  0x25   :  { %243 = vmatpush.bf16.msra.mxu1 %v689_v6  ;;  %v701_v38 = vld [vmem:[#allocation10 + $0x8] sm:$0xff]  ;;  %490 = vmatpush.bf16.msrb.mxu0 %v715_v40  ;;  %v714_v41 = vld [vmem:[#allocation11 + $0x30] sm:$0xff]  ;;  %v712_v43 = vld [vmem:[#allocation11 + $0x20] sm:$0xff] }
  0x26   :  { %408 = vmatpush.bf16.msra.mxu3 %v706_v27  ;;  %v713_v42 = vld [vmem:[#allocation11 + $0x28] sm:$0xff]  ;;  %v711_v44 = vld [vmem:[#allocation11 + $0x18] sm:$0xff]  ;;  %v710_v45 = vld [vmem:[#allocation11 + $0x10] sm:$0xff] }
  0x27   :  { %v727_v46 = vld [vmem:[%s1038_s6] ss:$0 sm:$0xff]  ;;  %v708_v53 = vld [vmem:[#allocation11] sm:$0xff] }
  0x28   :  { %326 = vmatpush.bf16.msra.mxu2 %v697_v14  ;;  %v709_v52 = vld [vmem:[#allocation11 + $0x8] sm:$0xff] }
  0x29   :  { %244 = vmatpush.bf16.msra.mxu1 %v688_v7  ;;  %491 = vmatpush.bf16.msrb.mxu0 %v714_v41  ;;  %v728_v54 = vld [vmem:[%s1040_s8] ss:$0 sm:$0xff]  ;;  %s920_s8 = smov [#allocation13]  }
  0x2a   :  { %409 = vmatpush.bf16.msra.mxu3 %v705_v28  ;;  %v729_v60 = vld [vmem:[%s1042_s10] ss:$0 sm:$0xff]  ;;  %s529_s10 = sshll.u32 %s920_s8, 4  ;;  %s530_s10 = int_to_ptr.vmem [resolvable:$true] %s529_s10 }
  0x2c   :  { %327 = vmatpush.bf16.msra.mxu2 %v696_v15 }
  0x2d   :  { %245 = vmatpush.bf16.msra.mxu1 %v687_v8  ;;  %492 = vmatpush.bf16.msrb.mxu0 %v713_v42 }
  0x2e   :  { %410 = vmatpush.bf16.msra.mxu3 %v704_v29 }
  0x30   :  { %328 = vmatpush.bf16.msra.mxu2 %v695_v16 }
  0x31   :  { %246 = vmatpush.bf16.msra.mxu1 %v686_v9  ;;  %493 = vmatpush.bf16.msrb.mxu0 %v712_v43 }
  0x32   :  { %411 = vmatpush.bf16.msra.mxu3 %v703_v30 }
  0x34   :  { %329 = vmatpush.bf16.msra.mxu2 %v694_v17 }
  0x35   :  { %247 = vmatpush.bf16.msra.mxu1 %v685_v10  ;;  %494 = vmatpush.bf16.msrb.mxu0 %v711_v44 }
  0x36   :  { %412 = vmatpush.bf16.msra.mxu3 %v702_v31 }
  0x38   :  { %330 = vmatpush.bf16.msra.mxu2 %v693_v24 }
  0x39   :  { %248 = vmatpush.bf16.msra.mxu1 %v684_v11  ;;  %495 = vmatpush.bf16.msrb.mxu0 %v710_v45 }
  0x3a   :  { %413 = vmatpush.bf16.msra.mxu3 %v701_v38 }
  0x3c   :  { %331 = vmatpush.bf16.msra.mxu2 %v692_v25 }
  0x3d   :  { %496 = vmatpush.bf16.msrb.mxu0 %v709_v52 }
  0x3e   :  { %414 = vmatpush.bf16.msra.mxu3 %v700_v39 }
  0x41   :  { %497 = vmatpush.bf16.msrb.mxu0 %v708_v53 }
  0xa0   :  { %v167_v19 = vpop.f32.mrf.mxu0 }
  0xa1   :  { %v168_v20 = vadd.f32 %v725_v18, %v167_v19 }
  0xa3   :  { %v171_v21 = vmax.f32 %v168_v20, 0.0 }
  0xa5   :  { %v172_v22 = vpack.c.bf16 %v171_v21, %v171_v21 }
  0xa7   :  { %249 = vmatmul.bf16.vlgmr.msra.gmra.mxu1 %v172_v22 }
  0xa8   :  { %v169_v23 = vpop.f32.mrf.mxu0 }
 0x124   :  { %v250_v33 = vpop.f32.mrf.mxu1 }
 0x125   :  { %v251_v34 = vadd.f32 %v726_v32, %v250_v33 }
 0x127   :  { %v254_v35 = vmax.f32 %v251_v34, 0.0 }
 0x129   :  { %v255_v36 = vpack.c.bf16 %v254_v35, %v254_v35 }
 0x12b   :  { %332 = vmatmul.bf16.vlgmr.msra.gmra.mxu2 %v255_v36 }
 0x12c   :  { %v252_v37 = vpop.f32.mrf.mxu1 }
 0x1ae   :  { %v333_v47 = vpop.f32.mrf.mxu2 }
 0x1af   :  { %v334_v48 = vadd.f32 %v727_v46, %v333_v47 }
 0x1b1   :  { %v337_v49 = vmax.f32 %v334_v48, 0.0 }
 0x1b3   :  { %v338_v50 = vpack.c.bf16 %v337_v49, %v337_v49 }
 0x1b5   :  { %415 = vmatmul.bf16.vlgmr.msra.gmra.mxu3 %v338_v50 }
 0x1b6   :  { %v335_v51 = vpop.f32.mrf.mxu2 }
 0x238   :  { %v416_v55 = vpop.f32.mrf.mxu3 }
 0x239   :  { %v417_v56 = vadd.f32 %v728_v54, %v416_v55 }
 0x23b   :  { %v420_v57 = vmax.f32 %v417_v56, 0.0 }
 0x23d   :  { %v421_v58 = vpack.c.bf16 %v420_v57, %v420_v57 }
 0x23f   :  { %498 = vmatmul.bf16.vlgmr.msrb.gmra.mxu0 %v421_v58 }
 0x240   :  { %v418_v59 = vpop.f32.mrf.mxu3 }
 0x2bc   :  { %v499_v61 = vpop.f32.mrf.mxu0 }
 0x2bd   :  { %v500_v62 = vadd.f32 %v729_v60, %v499_v61 }
 0x2bf   :  { %v681_v63 = vmul.f32 -1.442695, %v500_v62 }
 0x2c1   :  { %730 = vpow2.f32 %v681_v63 }
 0x2c4   :  { %v501_v0 = vpop.f32.mrf.mxu0 }
 0x2c7   :  { %v731_v1 = vpop.eup %730 }
 0x2c8   :  { %v506_v2 = vadd.f32 1.0, %v731_v1 }
 0x2ca   :  { %732 = vrcp.f32 %v506_v2  ;;  %v518_v6 = vand.u32 2147483648, %v506_v2  ;;  %v516_v8 = vand.u32 2147483647, %v506_v2  ;;  %vm512_vm2 = vweird.f32 %v506_v2 }
 0x2cc   :  { %v519_v10 = vor.u32 1.1754944e-38, %v518_v6  ;;  %vm517_vm4 = vcmp.eq.f32.partialorder %v516_v8, 8.507059e+37 }
 0x2d0   :  { %v733_v3 = vpop.eup %732 }
 0x2d1   :  { %v508_v4 = vmul.f32 %v733_v3, %v506_v2  ;;  %vm513_vm1 = vweird.f32 %v733_v3 }
 0x2d2   :  { %vm514_vm3 = vmor %vm512_vm2, %vm513_vm1 }
 0x2d3   :  { %v509_v5 = vsub.f32 1.0, %v508_v4 }
 0x2d5   :  { %v510_v7 = vmul.f32 %v733_v3, %v509_v5 }
 0x2d7   :  { %v511_v9 = vadd.f32 %v733_v3, %v510_v7 }
 0x2d9   :  { %v515_v11 = vsel %vm514_vm3, %v733_v3, %v511_v9 }
 0x2da   :  { %v520_v12 = vsel %vm517_vm4, %v519_v10, %v515_v11 }
 0x2db   :  { %v522_v13 = vpack.c.bf16 %v520_v12, %v520_v12 }
 0x2dd   :  { %523 = vst [vmem:[#allocation13] sm:$0xf] %v522_v13 }
 0x2de   :  { %534 = dma.vmem_to_hbm [thread:$0]  %s530_s10, 64, %s532_s12, [#allocation4]  }
 0x2df   :  { %910 = dma.done.wait [#allocation4], 64  }
 0x2e0   :  { %911 = vsyncadd [#allocation4], 4294967232 }
 0x2e1   :  { %539 = vsyncpa [#allocation3], 1 }
 0x2e2   :  { %540 = vsyncpa [#allocation6], 1 }
 0x2e3   :  { %541 = vsyncpa [#allocation9], 1 }
 0x2e4   :  { %542 = vsyncpa [#allocation12], 1 }
 0x2e5   :  { %543 = vsyncpa [#allocation4], 1 }

// kernel: tpu_custom_call.1
= control target key start
LH: loop header
LB: loop body
LE: loop exit
PB: predicated region body
PF: predicated region fallthrough
CT: control target
= control target key end

     0   :  { %16 = vsyncpa [#allocation3], 0  ;;  %s1032_s0 = inlined_call_operand.hbm [shape: f32[8,32], index: 0, kind: input, shape index: {}]   ;;  %s1033_s1 = inlined_call_operand.hbm [shape: bf16[32,128], index: 1, kind: input, shape index: {}]   ;;  %s1034_s2 = inlined_call_operand.vmem [shape: f32[1,128], index: 2, kind: input, shape index: {}]   ;;  %s1035_s3 = inlined_call_operand.hbm [shape: bf16[128,128], index: 3, kind: input, shape index: {}]   ;;  %s1036_s4 = inlined_call_operand.vmem [shape: f32[1,128], index: 4, kind: input, shape index: {}]   ;;  %s1037_s5 = inlined_call_operand.hbm [shape: bf16[128,128], index: 5, kind: input, shape index: {}]   ;;  %s1038_s6 = inlined_call_operand.vmem [shape: f32[1,128], index: 6, kind: input, shape index: {}]   ;;  %s1039_s7 = inlined_call_operand.hbm [shape: bf16[128,128], index: 7, kind: input, shape index: {}]   ;;  %s1040_s8 = inlined_call_operand.vmem [shape: f32[1,128], index: 8, kind: input, shape index: {}]   ;;  %s1041_s9 = inlined_call_operand.hbm [shape: bf16[128,128], index: 9, kind: input, shape index: {}]   ;;  %s1042_s10 = inlined_call_operand.vmem [shape: f32[1,128], index: 10, kind: input, shape index: {}]   ;;  %s1043_s11 = inlined_call_operand.hbm [shape: bf16[8,128], index: 11, kind: output, shape index: {}]  }
   0x1   :  { %17 = vsyncpa [#allocation6], 0 }
   0x2   :  { %18 = vsyncpa [#allocation9], 0 }
   0x3   :  { %19 = vsyncpa [#allocation12], 0  ;;  %s36_s19 = sshll.u32 %s1033_s1, 4  ;;  %s37_s19 = int_to_ptr.hbm [resolvable:$true] %s36_s19 }
   0x4   :  { %20 = vsyncpa [#allocation4], 0  ;;  %s912_s20 = smov [#allocation5]   ;;  %s66_s24 = sshll.u32 %s1037_s5, 4  ;;  %s67_s24 = int_to_ptr.hbm [resolvable:$true] %s66_s24 }
   0x5   :  { %s38_s21 = sshll.u32 %s912_s20, 4  ;;  %s913_s25 = smov 64   ;;  %s39_s21 = int_to_ptr.vmem [resolvable:$true] %s38_s21 }
   0x6   :  { %s914_s26 = smov 4   ;;  %s915_s27 = smov [#allocation8]  }
   0x7   :  { %44 = dma.hbm_to_vmem [thread:$0]  %s37_s19, 256, %s39_s21, [#allocation6], %s913_s25, %s913_s25, %s914_s26  }
   0x8   :  { %s68_s28 = sshll.u32 %s915_s27, 4  ;;  %s26_s30 = sshll.u32 %s1032_s0, 4  ;;  %s69_s28 = int_to_ptr.vmem [resolvable:$true] %s68_s28  ;;  %s27_s30 = int_to_ptr.hbm [resolvable:$true] %s26_s30 }
   0x9   :  { %74 = dma.hbm_to_vmem [thread:$0]  %s67_s24, 1024, %s69_s28, [#allocation9], %s913_s25, %s913_s25, %s914_s26  }
   0xa   :  { %s51_s13 = sshll.u32 %s1035_s3, 4  ;;  %s916_s14 = smov [#allocation2]   ;;  %s52_s13 = int_to_ptr.hbm [resolvable:$true] %s51_s13 }
   0xb   :  { %s28_s15 = sshll.u32 %s916_s14, 4  ;;  %s917_s16 = smov [#allocation7]   ;;  %s29_s15 = int_to_ptr.vmem [resolvable:$true] %s28_s15 }
   0xc   :  { %31 = dma.hbm_to_vmem [thread:$0]  %s27_s30, 128, %s29_s15, [#allocation3]  }
   0xd   :  { %s53_s17 = sshll.u32 %s917_s16, 4  ;;  %s81_s0 = sshll.u32 %s1039_s7, 4  ;;  %s54_s17 = int_to_ptr.vmem [resolvable:$true] %s53_s17  ;;  %s82_s0 = int_to_ptr.hbm [resolvable:$true] %s81_s0 }
   0xe   :  { %59 = dma.hbm_to_vmem [thread:$0]  %s52_s13, 1024, %s54_s17, [#allocation6], %s913_s25, %s913_s25, %s914_s26  }
   0xf   :  { %s96_s3 = sshll.u32 %s1041_s9, 4  ;;  %s918_s22 = smov [#allocation10]   ;;  %s97_s3 = int_to_ptr.hbm [resolvable:$true] %s96_s3 }
  0x10   :  { %s83_s23 = sshll.u32 %s918_s22, 4  ;;  %s919_s24 = smov [#allocation11]   ;;  %s84_s23 = int_to_ptr.vmem [resolvable:$true] %s83_s23 }
  0x11   :  { %89 = dma.hbm_to_vmem [thread:$0]  %s82_s0, 1024, %s84_s23, [#allocation9], %s913_s25, %s913_s25, %s914_s26  }
  0x12   :  { %s98_s7 = sshll.u32 %s919_s24, 4  ;;  %s99_s7 = int_to_ptr.vmem [resolvable:$true] %s98_s7 }
  0x13   :  { %104 = dma.hbm_to_vmem [thread:$0]  %s97_s3, 1024, %s99_s7, [#allocation12], %s913_s25, %s913_s25, %s914_s26  }
  0x14   :  { %902 = dma.done.wait [#allocation3], 128  }
  0x15   :  { %903 = vsyncadd [#allocation3], 4294967168 }
  0x16   :  { %904 = dma.done.wait [#allocation6], 1280  }
  0x17   :  { %905 = vsyncadd [#allocation6], 4294966016 }
  0x18   :  { %906 = dma.done.wait [#allocation9], 2048  }
  0x19   :  { %907 = vsyncadd [#allocation9], 4294965248 }
  0x1a   :  { %908 = dma.done.wait [#allocation12], 1024  }
  0x1b   :  { %909 = vsyncadd [#allocation12], 4294966272  ;;  %v683_v0 = vld [vmem:[#allocation5 + $0x8] sm:$0xff]  ;;  %v682_v2 = vld [vmem:[#allocation5] sm:$0xff]  ;;  %vm154_vm0 = vcmask 261120   ;;  %s531_s12 = sshll.u32 %s1043_s11, 4  ;;  %s532_s12 = int_to_ptr.hbm [resolvable:$true] %s531_s12 }
  0x1c   :  { %v691_v1 = vld [vmem:[#allocation7 + $0x38] sm:$0xff]  ;;  %164 = vmatpush.bf16.msra.mxu0 %v683_v0  ;;  %v132_v3 = vld [vmem:[#allocation2] sm:$0xff]  ;;  %v690_v4 = vld [vmem:[#allocation7 + $0x30] sm:$0xff] }
  0x1d   :  { %241 = vmatpush.bf16.msra.mxu1 %v691_v1  ;;  %v133_v5 = vpack.c.bf16 %v132_v3, %v132_v3  ;;  %v689_v6 = vld [vmem:[#allocation7 + $0x28] sm:$0xff]  ;;  %v688_v7 = vld [vmem:[#allocation7 + $0x20] sm:$0xff]  ;;  %v687_v8 = vld [vmem:[#allocation7 + $0x18] sm:$0xff] }
  0x1e   :  { %v686_v9 = vld [vmem:[#allocation7 + $0x10] sm:$0xff]  ;;  %v685_v10 = vld [vmem:[#allocation7 + $0x8] sm:$0xff]  ;;  %v684_v11 = vld [vmem:[#allocation7] sm:$0xff] }
  0x1f   :  { %v699_v12 = vld [vmem:[#allocation8 + $0x38] sm:$0xff]  ;;  %v698_v13 = vld [vmem:[#allocation8 + $0x30] sm:$0xff]  ;;  %v697_v14 = vld [vmem:[#allocation8 + $0x28] sm:$0xff] }
  0x20   :  { %165 = vmatpush.bf16.msra.mxu0 %v682_v2  ;;  %324 = vmatpush.bf16.msra.mxu2 %v699_v12  ;;  %v696_v15 = vld [vmem:[#allocation8 + $0x20] sm:$0xff]  ;;  %v695_v16 = vld [vmem:[#allocation8 + $0x18] sm:$0xff]  ;;  %v694_v17 = vld [vmem:[#allocation8 + $0x10] sm:$0xff] }
  0x21   :  { %242 = vmatpush.bf16.msra.mxu1 %v690_v4  ;;  %v725_v18 = vld [vmem:[%s1034_s2] ss:$0 sm:$0xff]  ;;  %v692_v25 = vld [vmem:[#allocation8] sm:$0xff]  ;;  %v707_v26 = vld [vmem:[#allocation10 + $0x38] sm:$0xff] }
  0x22   :  { %v693_v24 = vld [vmem:[#allocation8 + $0x8] sm:$0xff]  ;;  %407 = vmatpush.bf16.msra.mxu3 %v707_v26  ;;  %v706_v27 = vld [vmem:[#allocation10 + $0x30] sm:$0xff]  ;;  %v704_v29 = vld [vmem:[#allocation10 + $0x20] sm:$0xff] }
  0x23   :  { %552 = vmatmul.msk.bf16.vlgmr.msra.gmra.mxu0 %vm154_vm0, %v133_v5  ;;  %v705_v28 = vld [vmem:[#allocation10 + $0x28] sm:$0xff]  ;;  %v703_v30 = vld [vmem:[#allocation10 + $0x18] sm:$0xff]  ;;  %v702_v31 = vld [vmem:[#allocation10 + $0x10] sm:$0xff] }
  0x24   :  { %325 = vmatpush.bf16.msra.mxu2 %v698_v13  ;;  %v726_v32 = vld [vmem:[%s1036_s4] ss:$0 sm:$0xff]  ;;  %v700_v39 = vld [vmem:[#allocation10] sm:$0xff]  ;;  %v715_v40 = vld [vmem:[#allocation11 + $0x38] sm:$0xff] }
  0x25   :  { %243 = vmatpush.bf16.msra.mxu1 %v689_v6  ;;  %v701_v38 = vld [vmem:[#allocation10 + $0x8] sm:$0xff]  ;;  %490 = vmatpush.bf16.msrb.mxu0 %v715_v40  ;;  %v714_v41 = vld [vmem:[#allocation11 + $0x30] sm:$0xff]  ;;  %v712_v43 = vld [vmem:[#allocation11 + $0x20] sm:$0xff] }
  0x26   :  { %408 = vmatpush.bf16.msra.mxu3 %v706_v27  ;;  %v713_v42 = vld [vmem:[#allocation11 + $0x28] sm:$0xff]  ;;  %v711_v44 = vld [vmem:[#allocation11 + $0x18] sm:$0xff]  ;;  %v710_v45 = vld [vmem:[#allocation11 + $0x10] sm:$0xff] }
  0x27   :  { %v727_v46 = vld [vmem:[%s1038_s6] ss:$0 sm:$0xff]  ;;  %v708_v53 = vld [vmem:[#allocation11] sm:$0xff] }
  0x28   :  { %326 = vmatpush.bf16.msra.mxu2 %v697_v14  ;;  %v709_v52 = vld [vmem:[#allocation11 + $0x8] sm:$0xff] }
  0x29   :  { %244 = vmatpush.bf16.msra.mxu1 %v688_v7  ;;  %491 = vmatpush.bf16.msrb.mxu0 %v714_v41  ;;  %v728_v54 = vld [vmem:[%s1040_s8] ss:$0 sm:$0xff]  ;;  %s920_s8 = smov [#allocation13]  }
  0x2a   :  { %409 = vmatpush.bf16.msra.mxu3 %v705_v28  ;;  %v729_v60 = vld [vmem:[%s1042_s10] ss:$0 sm:$0xff]  ;;  %s529_s10 = sshll.u32 %s920_s8, 4  ;;  %s530_s10 = int_to_ptr.vmem [resolvable:$true] %s529_s10 }
  0x2c   :  { %327 = vmatpush.bf16.msra.mxu2 %v696_v15 }
  0x2d   :  { %245 = vmatpush.bf16.msra.mxu1 %v687_v8  ;;  %492 = vmatpush.bf16.msrb.mxu0 %v713_v42 }
  0x2e   :  { %410 = vmatpush.bf16.msra.mxu3 %v704_v29 }
  0x30   :  { %328 = vmatpush.bf16.msra.mxu2 %v695_v16 }
  0x31   :  { %246 = vmatpush.bf16.msra.mxu1 %v686_v9  ;;  %493 = vmatpush.bf16.msrb.mxu0 %v712_v43 }
  0x32   :  { %411 = vmatpush.bf16.msra.mxu3 %v703_v30 }
  0x34   :  { %329 = vmatpush.bf16.msra.mxu2 %v694_v17 }
  0x35   :  { %247 = vmatpush.bf16.msra.mxu1 %v685_v10  ;;  %494 = vmatpush.bf16.msrb.mxu0 %v711_v44 }
  0x36   :  { %412 = vmatpush.bf16.msra.mxu3 %v702_v31 }
  0x38   :  { %330 = vmatpush.bf16.msra.mxu2 %v693_v24 }
  0x39   :  { %248 = vmatpush.bf16.msra.mxu1 %v684_v11  ;;  %495 = vmatpush.bf16.msrb.mxu0 %v710_v45 }
  0x3a   :  { %413 = vmatpush.bf16.msra.mxu3 %v701_v38 }
  0x3c   :  { %331 = vmatpush.bf16.msra.mxu2 %v692_v25 }
  0x3d   :  { %496 = vmatpush.bf16.msrb.mxu0 %v709_v52 }
  0x3e   :  { %414 = vmatpush.bf16.msra.mxu3 %v700_v39 }
  0x41   :  { %497 = vmatpush.bf16.msrb.mxu0 %v708_v53 }
  0xa0   :  { %v167_v19 = vpop.f32.mrf.mxu0 }
  0xa1   :  { %v168_v20 = vadd.f32 %v725_v18, %v167_v19 }
  0xa3   :  { %v171_v21 = vmax.f32 %v168_v20, 0.0 }
  0xa5   :  { %v172_v22 = vpack.c.bf16 %v171_v21, %v171_v21 }
  0xa7   :  { %249 = vmatmul.bf16.vlgmr.msra.gmra.mxu1 %v172_v22 }
  0xa8   :  { %v169_v23 = vpop.f32.mrf.mxu0 }
 0x124   :  { %v250_v33 = vpop.f32.mrf.mxu1 }
 0x125   :  { %v251_v34 = vadd.f32 %v726_v32, %v250_v33 }
 0x127   :  { %v254_v35 = vmax.f32 %v251_v34, 0.0 }
 0x129   :  { %v255_v36 = vpack.c.bf16 %v254_v35, %v254_v35 }
 0x12b   :  { %332 = vmatmul.bf16.vlgmr.msra.gmra.mxu2 %v255_v36 }
 0x12c   :  { %v252_v37 = vpop.f32.mrf.mxu1 }
 0x1ae   :  { %v333_v47 = vpop.f32.mrf.mxu2 }
 0x1af   :  { %v334_v48 = vadd.f32 %v727_v46, %v333_v47 }
 0x1b1   :  { %v337_v49 = vmax.f32 %v334_v48, 0.0 }
 0x1b3   :  { %v338_v50 = vpack.c.bf16 %v337_v49, %v337_v49 }
 0x1b5   :  { %415 = vmatmul.bf16.vlgmr.msra.gmra.mxu3 %v338_v50 }
 0x1b6   :  { %v335_v51 = vpop.f32.mrf.mxu2 }
 0x238   :  { %v416_v55 = vpop.f32.mrf.mxu3 }
 0x239   :  { %v417_v56 = vadd.f32 %v728_v54, %v416_v55 }
 0x23b   :  { %v420_v57 = vmax.f32 %v417_v56, 0.0 }
 0x23d   :  { %v421_v58 = vpack.c.bf16 %v420_v57, %v420_v57 }
 0x23f   :  { %498 = vmatmul.bf16.vlgmr.msrb.gmra.mxu0 %v421_v58 }
 0x240   :  { %v418_v59 = vpop.f32.mrf.mxu3 }
 0x2bc   :  { %v499_v61 = vpop.f32.mrf.mxu0 }
 0x2bd   :  { %v500_v62 = vadd.f32 %v729_v60, %v499_v61 }
 0x2bf   :  { %v681_v63 = vmul.f32 -1.442695, %v500_v62 }
 0x2c1   :  { %730 = vpow2.f32 %v681_v63 }
 0x2c4   :  { %v501_v0 = vpop.f32.mrf.mxu0 }
 0x2c7   :  { %v731_v1 = vpop.eup %730 }
 0x2c8   :  { %v506_v2 = vadd.f32 1.0, %v731_v1 }
 0x2ca   :  { %732 = vrcp.f32 %v506_v2  ;;  %v518_v6 = vand.u32 2147483648, %v506_v2  ;;  %v516_v8 = vand.u32 2147483647, %v506_v2  ;;  %vm512_vm2 = vweird.f32 %v506_v2 }
 0x2cc   :  { %v519_v10 = vor.u32 1.1754944e-38, %v518_v6  ;;  %vm517_vm4 = vcmp.eq.f32.partialorder %v516_v8, 8.507059e+37 }
 0x2d0   :  { %v733_v3 = vpop.eup %732 }
 0x2d1   :  { %v508_v4 = vmul.f32 %v733_v3, %v506_v2  ;;  %vm513_vm1 = vweird.f32 %v733_v3 }
 0x2d2   :  { %vm514_vm3 = vmor %vm512_vm2, %vm513_vm1 }
 0x2d3   :  { %v509_v5 = vsub.f32 1.0, %v508_v4 }
 0x2d5   :  { %v510_v7 = vmul.f32 %v733_v3, %v509_v5 }
 0x2d7   :  { %v511_v9 = vadd.f32 %v733_v3, %v510_v7 }
 0x2d9   :  { %v515_v11 = vsel %vm514_vm3, %v733_v3, %v511_v9 }
 0x2da   :  { %v520_v12 = vsel %vm517_vm4, %v519_v10, %v515_v11 }
 0x2db   :  { %v522_v13 = vpack.c.bf16 %v520_v12, %v520_v12 }
 0x2dd   :  { %523 = vst [vmem:[#allocation13] sm:$0xf] %v522_v13 }
 0x2de   :  { %534 = dma.vmem_to_hbm [thread:$0]  %s530_s10, 64, %s532_s12, [#allocation4]  }
 0x2df   :  { %910 = dma.done.wait [#allocation4], 64  }
 0x2e0   :  { %911 = vsyncadd [#allocation4], 4294967232 }
 0x2e1   :  { %539 = vsyncpa [#allocation3], 1 }
 0x2e2   :  { %540 = vsyncpa [#allocation6], 1 }
 0x2e3   :  { %541 = vsyncpa [#allocation9], 1 }
 0x2e4   :  { %542 = vsyncpa [#allocation12], 1 }
 0x2e5   :  { %543 = vsyncpa [#allocation4], 1 }

</bundles_post_ra>
